<compile_context>
chip_gen: v6e
topology: v6e:2x2x1
jax: 0.10.0
libtpu: 0.0.40
codegen_flags: <defaults>
</compile_context>

<pallas_src>
import functools
import math

import jax
import jax.numpy as jnp
from jax import lax
from jax.experimental import pallas as pl
from jax.experimental.pallas import tpu as pltpu


LANE = 128   # output-lane padding for every weight / the kernel output
COORD = 3    # spatial coordinate dimension


def _rup(x, m):
    return (x + m - 1) // m * m


def _padw(a, rows):
    """Zero-pad a (k, H) weight to (rows, 128), stored bf16 (K-trimmed)."""
    out = jnp.zeros((rows, LANE), jnp.float32)
    out = out.at[: a.shape[0], : a.shape[1]].set(a.astype(jnp.float32))
    return out.astype(jnp.bfloat16)


def _padb(b):
    """Zero-pad a (1, H) bias to (1, 128), kept f32."""
    out = jnp.zeros((1, LANE), jnp.float32)
    return out.at[:, : b.shape[1]].set(b.astype(jnp.float32))


def _silu(x):
    # SiLU(x) = x * sigmoid(x) = 0.5 * x * (1 + tanh(x/2)): single EUP push.
    return 0.5 * x * (jnp.tanh(0.5 * x) + 1.0)


# ----------------------------- fused Pallas kernel -------------------------- #

def _egnn_fused_kernel(row_ref, coln_ref, rown_ref,            # (Ep,1),(Ep,1),(1,Ep) i32
                       hcat_ref, xs_ref, eattr_ref,            # (Np,Ke),(2Np,8),(Ep,ein_p) bf16
                       emb2_w_ref, emb2_b_ref,
                       w1s_ref, w1t_ref, w1r_ref, w1e_ref, b1_ref,
                       w2_ref, b2_ref,
                       wn1_ref, bn1_ref, wn2_ref, bn2_ref,
                       out_ref, *, hidden_nf):
    f32 = jnp.float32
    bf16 = jnp.bfloat16
    H = hidden_nf

    n_pad = hcat_ref.shape[0]
    e_pad = row_ref.shape[0]
    two_n = 2 * n_pad

    # ---- embedding_in2 + SiLU:  h0 = SiLU([h_emb | pos_diff] @ W + b) ----
    h0 = _silu(jnp.dot(hcat_ref[...], emb2_w_ref[...], preferred_element_type=f32)
               + emb2_b_ref[...])                               # (Np, 128) f32, lanes 0:H live
    h0_b = h0[:, :H].astype(bf16)                               # (Np, H)

    # ---- edge-MLP layer-1 src/tgt weights applied at node granularity ----
    a_n = jnp.dot(h0_b, w1s_ref[...], preferred_element_type=f32)   # (Np, 128)
    b_n = jnp.dot(h0_b, w1t_ref[...], preferred_element_type=f32)   # (Np, 128)
    ab = jnp.concatenate([a_n.astype(bf16), b_n.astype(bf16)], axis=0)  # (2Np, 128)

    # ---- single "two-hot" gather matmul:  W1s.h0[row] + W1t.h0[col] ----
    io2 = lax.broadcasted_iota(jnp.int32, (e_pad, two_n), 1)
    t2 = ((io2 == row_ref[...]).astype(bf16)
          + (io2 == coln_ref[...]).astype(bf16))                # (Ep, 2Np), two 1s per row
    gath = jnp.dot(t2, ab, preferred_element_type=f32)          # (Ep, 128)

    # ---- off-critical-path terms: radial and edge_attr contributions ----
    cd = jnp.dot(t2, xs_ref[...], preferred_element_type=f32)   # x[row]-x[col]  (Ep, 8)
    rad = jnp.dot((cd * cd).astype(bf16), w1r_ref[...],
                  preferred_element_type=f32)                   # radial * w1r   (Ep, 128)
    eterm = jnp.dot(eattr_ref[...], w1e_ref[...],
                    preferred_element_type=f32)                 # edge_attr @ W1e (Ep, 128)

    # ---- edge MLP: SiLU(layer1) -> Linear -> SiLU ----
    z = _silu(gath + rad + eterm + b1_ref[...])                 # (Ep, 128)
    m = _silu(jnp.dot(z[:, :H].astype(bf16), w2_ref[...], preferred_element_type=f32)
              + b2_ref[...])                                    # (Ep, 128)

    # ---- unsorted_segment_sum(m, row, N) as (Np, Ep) one-hot @ (Ep, H) ----
    io_s = lax.broadcasted_iota(jnp.int32, (n_pad, e_pad), 0)
    s1 = (io_s == rown_ref[...]).astype(bf16)                   # (Np, Ep)
    agg = jnp.dot(s1, m[:, :H].astype(bf16), preferred_element_type=f32)   # (Np, H)

    # ---- node MLP: Linear([h0 | agg]) -> SiLU -> Linear, residual ----
    ncat = jnp.concatenate([h0_b, agg.astype(bf16)], axis=-1)   # (Np, 2H)
    zn = _silu(jnp.dot(ncat, wn1_ref[...], preferred_element_type=f32) + bn1_ref[...])
    out = (jnp.dot(zn[:, :H].astype(bf16), wn2_ref[...], preferred_element_type=f32)
           + bn2_ref[...])
    out_ref[...] = h0 + out                                     # residual, (Np, 128) f32


# ------------------------------ parameters ---------------------------------- #

def init_params(key, hidden_nf, in_edge_nf):
    H = hidden_nf
    k_emb = _rup(H + COORD, 8)
    kH = _rup(H, 8)
    k2H = _rup(2 * H, 8)
    kE = _rup(max(in_edge_nf, 1), 8)
    keys = jax.random.split(key, 6)

    def lin(k, fan_in, fan_out):
        bound = 1.0 / math.sqrt(fan_in)
        kw, kb = jax.random.split(k)
        w = jax.random.uniform(kw, (fan_in, fan_out), jnp.float32, -bound, bound)
        b = jax.random.uniform(kb, (1, fan_out), jnp.float32, -bound, bound)
        return w, b

    p = {}
    # Embedding(93, H) with uniform(-sqrt(3), sqrt(3)) init (kept f32, host gather).
    s3 = math.sqrt(3.0)
    p["emb_w"] = jax.random.uniform(keys[0], (93, H), jnp.float32, -s3, s3)

    # embedding_in2: Linear(H + 3, H); K trimmed to k_emb, out lanes padded to 128.
    w, b = lin(keys[1], H + COORD, H)
    p["emb2_w"] = _padw(w, k_emb)
    p["emb2_b"] = _padb(b)

    # edge_mlp: Linear(2H+1+Ein, H) -> SiLU -> Linear(H, H) -> SiLU.
    # Layer-1 weight split at concat boundaries [source | target | radial | eattr].
    din = 2 * H + 1 + in_edge_nf
    w, b = lin(keys[2], din, H)
    p["e_w1s"] = _padw(w[:H], kH)
    p["e_w1t"] = _padw(w[H:2 * H], kH)
    # Radial row replicated over the 3 coordinate rows so (cd*cd) @ W1r == radial * w1r.
    w1r = jnp.broadcast_to(w[2 * H:2 * H + 1], (COORD, H))
    p["e_w1r"] = _padw(w1r, 8)
    p["e_w1e"] = _padw(w[2 * H + 1:], kE)
    p["e_b1"] = _padb(b)
    w, b = lin(keys[3], H, H)
    p["e_w2"] = _padw(w, kH)
    p["e_b2"] = _padb(b)

    # node_mlp: Linear(2H, H) -> SiLU -> Linear(H, H); layer-1 K = 2H ([h | agg]).
    w, b = lin(keys[4], 2 * H, H)
    p["n_w1"] = _padw(w, k2H)
    p["n_b1"] = _padb(b)
    w, b = lin(keys[5], H, H)
    p["n_w2"] = _padw(w, kH)
    p["n_b2"] = _padb(b)
    return p


# -------------------------------- forward ----------------------------------- #

def egnn_encode_forward(params, h_types, x, edges, edge_attr, pos_diff):
    H = params["emb_w"].shape[1]
    N = h_types.shape[0]
    E = edges.shape[1]
    ein = edge_attr.shape[1]

    n_pad = _rup(N, 8)
    e_pad = _rup(E, 8)
    k_emb = params["emb2_w"].shape[0]
    ein_pad = params["e_w1e"].shape[0]
    bf16 = jnp.bfloat16

    # h = embedding_in(h - 1): data-dependent table gather kept as JAX glue.
    # TODO(synk): jnp.take clamps out-of-range atom ids where torch Embedding raises.
    h_emb = jnp.take(params["emb_w"], h_types - 1, axis=0)              # (N, H)

    # Node features, K-trimmed (no 128-lane host padding): [h_emb | pos_diff | 0].
    hcat = jnp.zeros((n_pad, k_emb), bf16)
    hcat = hcat.at[:N, :H].set(h_emb.astype(bf16))
    hcat = hcat.at[:N, H:H + COORD].set(pos_diff.astype(bf16))

    # Stacked +/- coordinates: two-hot @ [x; -x] = x[row] - x[col].
    x8 = jnp.zeros((n_pad, 8), bf16).at[:N, :COORD].set(x.astype(bf16))
    xs = jnp.concatenate([x8, -x8], axis=0)                             # (2*n_pad, 8)

    ea = jnp.zeros((e_pad, ein_pad), bf16).at[:E, :ein].set(edge_attr.astype(bf16))

    # Edge indices, padded with an out-of-range sentinel so padded edges match
    # nothing in the gather (range 2*n_pad) nor the scatter (range n_pad).
    sent = jnp.int32(2 * n_pad)
    row = edges[0].astype(jnp.int32)
    col = edges[1].astype(jnp.int32)
    row_p = jnp.full((e_pad,), sent, jnp.int32).at[:E].set(row)
    col_p = jnp.full((e_pad,), sent, jnp.int32).at[:E].set(col)
    coln_p = col_p + jnp.int32(n_pad)    # target indices into the [A; B] stacked RHS

    operands = (
        row_p[:, None], coln_p[:, None], row_p[None, :],
        hcat, xs, ea,
        params["emb2_w"], params["emb2_b"],
        params["e_w1s"], params["e_w1t"], params["e_w1r"], params["e_w1e"],
        params["e_b1"], params["e_w2"], params["e_b2"],
        params["n_w1"], params["n_b1"], params["n_w2"], params["n_b2"],
    )

    kernel = functools.partial(_egnn_fused_kernel, hidden_nf=H)
    out_pad = pl.pallas_call(
        kernel,
        out_shape=jax.ShapeDtypeStruct((n_pad, LANE), jnp.float32),
        in_specs=[pl.BlockSpec(memory_space=pltpu.MemorySpace.VMEM)] * len(operands),
        out_specs=pl.BlockSpec(memory_space=pltpu.MemorySpace.VMEM),
    )(*operands)

    return out_pad[:N, :H]


if __name__ == "__main__":
    key = jax.random.PRNGKey(0)
    k1, k2, k3, k4, k5, kp = jax.random.split(key, 6)

    N, H, E, EIN = 16, 32, 32, 4   # nodes, hidden_nf, edges, in_edge_nf

    h_types = jax.random.randint(k1, (N,), 1, 94)                 # atom ids in [1, 93]
    x = jax.random.normal(k2, (N, 3), jnp.float32)                # coordinates
    pos_diff = jax.random.normal(k3, (N, 3), jnp.float32)         # (N, 3)
    edges = jax.random.randint(k4, (2, E), 0, N)                  # (row, col)
    edge_attr = jax.random.normal(k5, (E, EIN), jnp.float32)      # (E, in_edge_nf)

    params = init_params(kp, H, EIN)

    fwd = jax.jit(functools.partial(egnn_encode_forward, params))
    out = fwd(h_types, x, edges, edge_attr, pos_diff)
    jax.block_until_ready(out)
    assert out.shape == (N, H) and out.dtype == jnp.float32
    assert bool(jnp.all(jnp.isfinite(out)))
    print("KERNEL_OK")
</pallas_src>

<mosaic_0001>
module attributes {stable_mosaic.version = 11 : i64} {
  func.func @_egnn_fused_kernel(%arg0: memref<32x1xi32, #tpu.memory_space<vmem>>, %arg1: memref<32x1xi32, #tpu.memory_space<vmem>>, %arg2: memref<1x32xi32, #tpu.memory_space<vmem>>, %arg3: memref<16x40xbf16, #tpu.memory_space<vmem>>, %arg4: memref<32x8xbf16, #tpu.memory_space<vmem>>, %arg5: memref<32x8xbf16, #tpu.memory_space<vmem>>, %arg6: memref<40x128xbf16, #tpu.memory_space<vmem>>, %arg7: memref<1x128xf32, #tpu.memory_space<vmem>>, %arg8: memref<32x128xbf16, #tpu.memory_space<vmem>>, %arg9: memref<32x128xbf16, #tpu.memory_space<vmem>>, %arg10: memref<8x128xbf16, #tpu.memory_space<vmem>>, %arg11: memref<8x128xbf16, #tpu.memory_space<vmem>>, %arg12: memref<1x128xf32, #tpu.memory_space<vmem>>, %arg13: memref<32x128xbf16, #tpu.memory_space<vmem>>, %arg14: memref<1x128xf32, #tpu.memory_space<vmem>>, %arg15: memref<64x128xbf16, #tpu.memory_space<vmem>>, %arg16: memref<1x128xf32, #tpu.memory_space<vmem>>, %arg17: memref<32x128xbf16, #tpu.memory_space<vmem>>, %arg18: memref<1x128xf32, #tpu.memory_space<vmem>>, %arg19: memref<16x128xf32, #tpu.memory_space<vmem>>) attributes {dimension_semantics = [], scalar_prefetch = 0 : i64, scratch_operands = 0 : i64, tpu.core_type = #tpu.core_type<tc>} {
    %c0 = arith.constant 0 : index
    %c0_0 = arith.constant 0 : index
    %0 = vector.load %arg3[%c0, %c0_0] : memref<16x40xbf16, #tpu.memory_space<vmem>>, vector<16x40xbf16>
    %c0_1 = arith.constant 0 : index
    %c0_2 = arith.constant 0 : index
    %1 = vector.load %arg6[%c0_1, %c0_2] : memref<40x128xbf16, #tpu.memory_space<vmem>>, vector<40x128xbf16>
    %cst = arith.constant dense<0.000000e+00> : vector<16x128xf32>
    %2 = tpu.matmul %0, %1, %cst {dimension_numbers = #tpu.dot_dimension_numbers<[1], [0], [0], [1], [0, 0, 1, 1], [], []>} : vector<16x40xbf16>, vector<40x128xbf16>, vector<16x128xf32> -> vector<16x128xf32>
    %c0_3 = arith.constant 0 : index
    %c0_4 = arith.constant 0 : index
    %3 = vector.load %arg7[%c0_3, %c0_4] : memref<1x128xf32, #tpu.memory_space<vmem>>, vector<1x128xf32>
    %4 = vector.broadcast %3 : vector<1x128xf32> to vector<16x128xf32>
    %5 = arith.addf %2, %4 : vector<16x128xf32>
    %cst_5 = arith.constant 5.000000e-01 : f32
    %6 = vector.broadcast %cst_5 : f32 to vector<16x128xf32>
    %7 = arith.mulf %6, %5 : vector<16x128xf32>
    %cst_6 = arith.constant 5.000000e-01 : f32
    %8 = vector.broadcast %cst_6 : f32 to vector<16x128xf32>
    %9 = arith.mulf %8, %5 : vector<16x128xf32>
    %10 = math.tanh %9 : vector<16x128xf32>
    %cst_7 = arith.constant 1.000000e+00 : f32
    %11 = vector.broadcast %cst_7 : f32 to vector<16x128xf32>
    %12 = arith.addf %10, %11 : vector<16x128xf32>
    %13 = arith.mulf %7, %12 : vector<16x128xf32>
    %14 = vector.extract_strided_slice %13 {offsets = [0, 0], sizes = [16, 32], strides = [1, 1]} : vector<16x128xf32> to vector<16x32xf32>
    %15 = arith.truncf %14 : vector<16x32xf32> to vector<16x32xbf16>
    %c0_8 = arith.constant 0 : index
    %c0_9 = arith.constant 0 : index
    %16 = vector.load %arg8[%c0_8, %c0_9] : memref<32x128xbf16, #tpu.memory_space<vmem>>, vector<32x128xbf16>
    %cst_10 = arith.constant dense<0.000000e+00> : vector<16x128xf32>
    %17 = tpu.matmul %15, %16, %cst_10 {dimension_numbers = #tpu.dot_dimension_numbers<[1], [0], [0], [1], [0, 0, 1, 1], [], []>} : vector<16x32xbf16>, vector<32x128xbf16>, vector<16x128xf32> -> vector<16x128xf32>
    %c0_11 = arith.constant 0 : index
    %c0_12 = arith.constant 0 : index
    %18 = vector.load %arg9[%c0_11, %c0_12] : memref<32x128xbf16, #tpu.memory_space<vmem>>, vector<32x128xbf16>
    %cst_13 = arith.constant dense<0.000000e+00> : vector<16x128xf32>
    %19 = tpu.matmul %15, %18, %cst_13 {dimension_numbers = #tpu.dot_dimension_numbers<[1], [0], [0], [1], [0, 0, 1, 1], [], []>} : vector<16x32xbf16>, vector<32x128xbf16>, vector<16x128xf32> -> vector<16x128xf32>
    %20 = arith.truncf %17 : vector<16x128xf32> to vector<16x128xbf16>
    %21 = arith.truncf %19 : vector<16x128xf32> to vector<16x128xbf16>
    %22 = tpu.concatenate %20, %21 in 0 : vector<16x128xbf16>, vector<16x128xbf16> -> vector<32x128xbf16>
    %23 = tpu.iota {dimensions = array<i32: 1>} : vector<32x32xi32>
    %c0_14 = arith.constant 0 : index
    %c0_15 = arith.constant 0 : index
    %24 = vector.load %arg0[%c0_14, %c0_15] : memref<32x1xi32, #tpu.memory_space<vmem>>, vector<32x1xi32>
    %25 = vector.broadcast %24 : vector<32x1xi32> to vector<32x32xi32>
    %26 = arith.cmpi eq, %23, %25 : vector<32x32xi32>
    %27 = arith.extui %26 : vector<32x32xi1> to vector<32x32xi32>
    %28 = arith.sitofp %27 : vector<32x32xi32> to vector<32x32xf32>
    %29 = arith.truncf %28 : vector<32x32xf32> to vector<32x32xbf16>
    %c0_16 = arith.constant 0 : index
    %c0_17 = arith.constant 0 : index
    %30 = vector.load %arg1[%c0_16, %c0_17] : memref<32x1xi32, #tpu.memory_space<vmem>>, vector<32x1xi32>
    %31 = vector.broadcast %30 : vector<32x1xi32> to vector<32x32xi32>
    %32 = arith.cmpi eq, %23, %31 : vector<32x32xi32>
    %33 = arith.extui %32 : vector<32x32xi1> to vector<32x32xi32>
    %34 = arith.sitofp %33 : vector<32x32xi32> to vector<32x32xf32>
    %35 = arith.truncf %34 : vector<32x32xf32> to vector<32x32xbf16>
    %36 = arith.addf %29, %35 : vector<32x32xbf16>
    %cst_18 = arith.constant dense<0.000000e+00> : vector<32x128xf32>
    %37 = tpu.matmul %36, %22, %cst_18 {dimension_numbers = #tpu.dot_dimension_numbers<[1], [0], [0], [1], [0, 0, 1, 1], [], []>} : vector<32x32xbf16>, vector<32x128xbf16>, vector<32x128xf32> -> vector<32x128xf32>
    %c0_19 = arith.constant 0 : index
    %c0_20 = arith.constant 0 : index
    %38 = vector.load %arg4[%c0_19, %c0_20] : memref<32x8xbf16, #tpu.memory_space<vmem>>, vector<32x8xbf16>
    %cst_21 = arith.constant dense<0.000000e+00> : vector<32x8xf32>
    %39 = tpu.matmul %36, %38, %cst_21 {dimension_numbers = #tpu.dot_dimension_numbers<[1], [0], [0], [1], [0, 0, 1, 1], [], []>} : vector<32x32xbf16>, vector<32x8xbf16>, vector<32x8xf32> -> vector<32x8xf32>
    %40 = arith.mulf %39, %39 : vector<32x8xf32>
    %41 = arith.truncf %40 : vector<32x8xf32> to vector<32x8xbf16>
    %c0_22 = arith.constant 0 : index
    %c0_23 = arith.constant 0 : index
    %42 = vector.load %arg10[%c0_22, %c0_23] : memref<8x128xbf16, #tpu.memory_space<vmem>>, vector<8x128xbf16>
    %cst_24 = arith.constant dense<0.000000e+00> : vector<32x128xf32>
    %43 = tpu.matmul %41, %42, %cst_24 {dimension_numbers = #tpu.dot_dimension_numbers<[1], [0], [0], [1], [0, 0, 1, 1], [], []>} : vector<32x8xbf16>, vector<8x128xbf16>, vector<32x128xf32> -> vector<32x128xf32>
    %c0_25 = arith.constant 0 : index
    %c0_26 = arith.constant 0 : index
    %44 = vector.load %arg5[%c0_25, %c0_26] : memref<32x8xbf16, #tpu.memory_space<vmem>>, vector<32x8xbf16>
    %c0_27 = arith.constant 0 : index
    %c0_28 = arith.constant 0 : index
    %45 = vector.load %arg11[%c0_27, %c0_28] : memref<8x128xbf16, #tpu.memory_space<vmem>>, vector<8x128xbf16>
    %cst_29 = arith.constant dense<0.000000e+00> : vector<32x128xf32>
    %46 = tpu.matmul %44, %45, %cst_29 {dimension_numbers = #tpu.dot_dimension_numbers<[1], [0], [0], [1], [0, 0, 1, 1], [], []>} : vector<32x8xbf16>, vector<8x128xbf16>, vector<32x128xf32> -> vector<32x128xf32>
    %47 = arith.addf %37, %43 : vector<32x128xf32>
    %48 = arith.addf %47, %46 : vector<32x128xf32>
    %c0_30 = arith.constant 0 : index
    %c0_31 = arith.constant 0 : index
    %49 = vector.load %arg12[%c0_30, %c0_31] : memref<1x128xf32, #tpu.memory_space<vmem>>, vector<1x128xf32>
    %50 = vector.broadcast %49 : vector<1x128xf32> to vector<32x128xf32>
    %51 = arith.addf %48, %50 : vector<32x128xf32>
    %cst_32 = arith.constant 5.000000e-01 : f32
    %52 = vector.broadcast %cst_32 : f32 to vector<32x128xf32>
    %53 = arith.mulf %52, %51 : vector<32x128xf32>
    %cst_33 = arith.constant 5.000000e-01 : f32
    %54 = vector.broadcast %cst_33 : f32 to vector<32x128xf32>
    %55 = arith.mulf %54, %51 : vector<32x128xf32>
    %56 = math.tanh %55 : vector<32x128xf32>
    %cst_34 = arith.constant 1.000000e+00 : f32
    %57 = vector.broadcast %cst_34 : f32 to vector<32x128xf32>
    %58 = arith.addf %56, %57 : vector<32x128xf32>
    %59 = arith.mulf %53, %58 : vector<32x128xf32>
    %60 = vector.extract_strided_slice %59 {offsets = [0, 0], sizes = [32, 32], strides = [1, 1]} : vector<32x128xf32> to vector<32x32xf32>
    %61 = arith.truncf %60 : vector<32x32xf32> to vector<32x32xbf16>
    %c0_35 = arith.constant 0 : index
    %c0_36 = arith.constant 0 : index
    %62 = vector.load %arg13[%c0_35, %c0_36] : memref<32x128xbf16, #tpu.memory_space<vmem>>, vector<32x128xbf16>
    %cst_37 = arith.constant dense<0.000000e+00> : vector<32x128xf32>
    %63 = tpu.matmul %61, %62, %cst_37 {dimension_numbers = #tpu.dot_dimension_numbers<[1], [0], [0], [1], [0, 0, 1, 1], [], []>} : vector<32x32xbf16>, vector<32x128xbf16>, vector<32x128xf32> -> vector<32x128xf32>
    %c0_38 = arith.constant 0 : index
    %c0_39 = arith.constant 0 : index
    %64 = vector.load %arg14[%c0_38, %c0_39] : memref<1x128xf32, #tpu.memory_space<vmem>>, vector<1x128xf32>
    %65 = vector.broadcast %64 : vector<1x128xf32> to vector<32x128xf32>
    %66 = arith.addf %63, %65 : vector<32x128xf32>
    %cst_40 = arith.constant 5.000000e-01 : f32
    %67 = vector.broadcast %cst_40 : f32 to vector<32x128xf32>
    %68 = arith.mulf %67, %66 : vector<32x128xf32>
    %cst_41 = arith.constant 5.000000e-01 : f32
    %69 = vector.broadcast %cst_41 : f32 to vector<32x128xf32>
    %70 = arith.mulf %69, %66 : vector<32x128xf32>
    %71 = math.tanh %70 : vector<32x128xf32>
    %cst_42 = arith.constant 1.000000e+00 : f32
    %72 = vector.broadcast %cst_42 : f32 to vector<32x128xf32>
    %73 = arith.addf %71, %72 : vector<32x128xf32>
    %74 = arith.mulf %68, %73 : vector<32x128xf32>
    %75 = tpu.iota {dimensions = array<i32: 0>} : vector<16x32xi32>
    %c0_43 = arith.constant 0 : index
    %c0_44 = arith.constant 0 : index
    %76 = vector.load %arg2[%c0_43, %c0_44] : memref<1x32xi32, #tpu.memory_space<vmem>>, vector<1x32xi32>
    %77 = vector.broadcast %76 : vector<1x32xi32> to vector<16x32xi32>
    %78 = arith.cmpi eq, %75, %77 : vector<16x32xi32>
    %79 = arith.extui %78 : vector<16x32xi1> to vector<16x32xi32>
    %80 = arith.sitofp %79 : vector<16x32xi32> to vector<16x32xf32>
    %81 = arith.truncf %80 : vector<16x32xf32> to vector<16x32xbf16>
    %82 = vector.extract_strided_slice %74 {offsets = [0, 0], sizes = [32, 32], strides = [1, 1]} : vector<32x128xf32> to vector<32x32xf32>
    %83 = arith.truncf %82 : vector<32x32xf32> to vector<32x32xbf16>
    %cst_45 = arith.constant dense<0.000000e+00> : vector<16x32xf32>
    %84 = tpu.matmul %81, %83, %cst_45 {dimension_numbers = #tpu.dot_dimension_numbers<[1], [0], [0], [1], [0, 0, 1, 1], [], []>} : vector<16x32xbf16>, vector<32x32xbf16>, vector<16x32xf32> -> vector<16x32xf32>
    %85 = arith.truncf %84 : vector<16x32xf32> to vector<16x32xbf16>
    %86 = tpu.concatenate %15, %85 in 1 : vector<16x32xbf16>, vector<16x32xbf16> -> vector<16x64xbf16>
    %c0_46 = arith.constant 0 : index
    %c0_47 = arith.constant 0 : index
    %87 = vector.load %arg15[%c0_46, %c0_47] : memref<64x128xbf16, #tpu.memory_space<vmem>>, vector<64x128xbf16>
    %cst_48 = arith.constant dense<0.000000e+00> : vector<16x128xf32>
    %88 = tpu.matmul %86, %87, %cst_48 {dimension_numbers = #tpu.dot_dimension_numbers<[1], [0], [0], [1], [0, 0, 1, 1], [], []>} : vector<16x64xbf16>, vector<64x128xbf16>, vector<16x128xf32> -> vector<16x128xf32>
    %c0_49 = arith.constant 0 : index
    %c0_50 = arith.constant 0 : index
    %89 = vector.load %arg16[%c0_49, %c0_50] : memref<1x128xf32, #tpu.memory_space<vmem>>, vector<1x128xf32>
    %90 = vector.broadcast %89 : vector<1x128xf32> to vector<16x128xf32>
    %91 = arith.addf %88, %90 : vector<16x128xf32>
    %cst_51 = arith.constant 5.000000e-01 : f32
    %92 = vector.broadcast %cst_51 : f32 to vector<16x128xf32>
    %93 = arith.mulf %92, %91 : vector<16x128xf32>
    %cst_52 = arith.constant 5.000000e-01 : f32
    %94 = vector.broadcast %cst_52 : f32 to vector<16x128xf32>
    %95 = arith.mulf %94, %91 : vector<16x128xf32>
    %96 = math.tanh %95 : vector<16x128xf32>
    %cst_53 = arith.constant 1.000000e+00 : f32
    %97 = vector.broadcast %cst_53 : f32 to vector<16x128xf32>
    %98 = arith.addf %96, %97 : vector<16x128xf32>
    %99 = arith.mulf %93, %98 : vector<16x128xf32>
    %100 = vector.extract_strided_slice %99 {offsets = [0, 0], sizes = [16, 32], strides = [1, 1]} : vector<16x128xf32> to vector<16x32xf32>
    %101 = arith.truncf %100 : vector<16x32xf32> to vector<16x32xbf16>
    %c0_54 = arith.constant 0 : index
    %c0_55 = arith.constant 0 : index
    %102 = vector.load %arg17[%c0_54, %c0_55] : memref<32x128xbf16, #tpu.memory_space<vmem>>, vector<32x128xbf16>
    %cst_56 = arith.constant dense<0.000000e+00> : vector<16x128xf32>
    %103 = tpu.matmul %101, %102, %cst_56 {dimension_numbers = #tpu.dot_dimension_numbers<[1], [0], [0], [1], [0, 0, 1, 1], [], []>} : vector<16x32xbf16>, vector<32x128xbf16>, vector<16x128xf32> -> vector<16x128xf32>
    %c0_57 = arith.constant 0 : index
    %c0_58 = arith.constant 0 : index
    %104 = vector.load %arg18[%c0_57, %c0_58] : memref<1x128xf32, #tpu.memory_space<vmem>>, vector<1x128xf32>
    %105 = vector.broadcast %104 : vector<1x128xf32> to vector<16x128xf32>
    %106 = arith.addf %103, %105 : vector<16x128xf32>
    %107 = arith.addf %13, %106 : vector<16x128xf32>
    %c0_59 = arith.constant 0 : index
    %c0_60 = arith.constant 0 : index
    %108 = vector.load %arg19[%c0_59, %c0_60] : memref<16x128xf32, #tpu.memory_space<vmem>>, vector<16x128xf32>
    tpu.vector_store %arg19[%c0_59, %c0_60], %107 {strides = array<i32>} : memref<16x128xf32, #tpu.memory_space<vmem>>, vector<16x128xf32>,
    return
  }
}

</mosaic_0001>

<bundles_post_ra>
// kernel: egnn_encode_forward.1
= control target key start
LH: loop header
LB: loop body
LE: loop exit
PB: predicated region body
PF: predicated region fallthrough
CT: control target
= control target key end

     0   :  { %s1524_s0 = inlined_call_operand.vmem [shape: s32[32,1], index: 0, kind: input, shape index: {}]   ;;  %s1525_s1 = inlined_call_operand.vmem [shape: s32[32,1], index: 1, kind: input, shape index: {}]   ;;  %s1526_s2 = inlined_call_operand.vmem [shape: s32[1,32], index: 2, kind: input, shape index: {}]   ;;  %s1527_s3 = inlined_call_operand.vmem [shape: bf16[16,40], index: 3, kind: input, shape index: {}]   ;;  %s1528_s4 = inlined_call_operand.vmem [shape: bf16[32,8], index: 4, kind: input, shape index: {}]   ;;  %s1529_s5 = inlined_call_operand.vmem [shape: bf16[32,8], index: 5, kind: input, shape index: {}]   ;;  %s1530_s6 = inlined_call_operand.vmem [shape: bf16[40,128], index: 6, kind: input, shape index: {}]   ;;  %s1531_s7 = inlined_call_operand.vmem [shape: f32[1,128], index: 7, kind: input, shape index: {}]   ;;  %s1532_s8 = inlined_call_operand.vmem [shape: bf16[32,128], index: 8, kind: input, shape index: {}]   ;;  %s1533_s9 = inlined_call_operand.vmem [shape: bf16[32,128], index: 9, kind: input, shape index: {}]   ;;  %s1534_s10 = inlined_call_operand.vmem [shape: bf16[8,128], index: 10, kind: input, shape index: {}]   ;;  %s1535_s11 = inlined_call_operand.vmem [shape: bf16[8,128], index: 11, kind: input, shape index: {}]   ;;  %s1536_s12 = inlined_call_operand.vmem [shape: f32[1,128], index: 12, kind: input, shape index: {}]   ;;  %s1537_s13 = inlined_call_operand.vmem [shape: bf16[32,128], index: 13, kind: input, shape index: {}]   ;;  %s1538_s14 = inlined_call_operand.vmem [shape: f32[1,128], index: 14, kind: input, shape index: {}]   ;;  %s1539_s15 = inlined_call_operand.vmem [shape: bf16[64,128], index: 15, kind: input, shape index: {}]   ;;  %s1540_s16 = inlined_call_operand.vmem [shape: f32[1,128], index: 16, kind: input, shape index: {}]   ;;  %s1541_s17 = inlined_call_operand.vmem [shape: bf16[32,128], index: 17, kind: input, shape index: {}]   ;;  %s1542_s18 = inlined_call_operand.vmem [shape: f32[1,128], index: 18, kind: input, shape index: {}]   ;;  %s1543_s19 = inlined_call_operand.hbm [shape: f32[16,128], index: 19, kind: output, shape index: {}]  }
   0x1   :  { %1546 = sst [smem:[#allocation5_spill]] %s1524_s0 }
   0x2   :  { %1547 = sst [smem:[#allocation6_spill]] %s1525_s1 }
   0x3   :  { %1548 = sst [smem:[#allocation7_spill]] %s1526_s2 }
   0x4   :  { %1549 = sst [smem:[#allocation8_spill]] %s1527_s3 }
   0x5   :  { %1550 = sst [smem:[#allocation9_spill]] %s1538_s14 }
   0x6   :  { %s1551_s20 = sld [smem:[#allocation6_spill]]  ;;  %v1230_v2 = vmov 0   ;;  %v1164_v3 = vld [vmem:[%s1530_s6 + $0x10] ss:$0 sps:$4 sm:$0xff]   ;;  %vm102_vm0 = vcmask 1043456   ;;  %v1231_v4 = vmov 0.0  }
   0x7   :  { %s1552_s14 = sld [smem:[#allocation5_spill]]  ;;  %1163 = vset.pattern.permute.xlu1 %v1230_v2  ;;  %1162 = vset.pattern.permute.xlu0 %v1230_v2  ;;  %v104_v5 = vsel %vm102_vm0, %v1164_v3, 0  ;;  %vm1232_vm1 = vmmov 0   ;;  %v1165_v8 = vld [vmem:[%s1530_s6 + $0x8] sm:$0xff]   ;;  %v1166_v11 = vld [vmem:[%s1530_s6] sm:$0xff]   ;;  %vm98_vm2 = vcmask 326656  }
   0x8   :  { %1063 = vmatprep.subr.bf16.mxu0 %v1231_v4  ;;  %1069 = vmatprep.mubr.msk.bf16.mxu0 %vm1232_vm1, %v1231_v4  ;;  %v1168_v12 = vld [vmem:[%s1528_s4 + $0x8] sm:$0xff]   ;;  %s1553_s27 = sld [smem:[#allocation8_spill]]  ;;  %v1169_v16 = vld [vmem:[%s1528_s4] sm:$0xff]  }
   0x9   :  { %1064 = vmatpush3.bf16.msra.mxu0 %v104_v5  ;;  %1073 = vmatprep.subr.bf16.mxu1 %v1231_v4 }
   0xa   :  { %1065 = vmatprep.subr.bf16.mxu0 %v1231_v4  ;;  %1077 = vmatprep.mubr.msk.bf16.mxu1 %vm1232_vm1, %v1231_v4 }
   0xc   :  { %v308_v0 = vld [vmem:[%s1551_s20] sm:$0xff]  ;;  %v309_v6 = vld [vmem:[%s1551_s20 + $0x8] sm:$0xff]  ;;  %v311_v13 = vld [vmem:[%s1551_s20 + $0x18] sm:$0xff] }
   0xd   :  { %v278_v1 = vld [vmem:[%s1552_s14] sm:$0xff]  ;;  %313 = vperm.xlu1 %1163, %v308_v0   ;;  %v279_v7 = vld [vmem:[%s1552_s14 + $0x8] sm:$0xff]  ;;  %v281_v9 = vld [vmem:[%s1552_s14 + $0x18] sm:$0xff]  ;;  %1066 = vmatpush3.bf16.msra.mxu0 %v1165_v8 }
   0xe   :  { %283 = vperm.xlu0 %1162, %v278_v1   ;;  %v280_v10 = vld [vmem:[%s1552_s14 + $0x10] sm:$0xff]  ;;  %1067 = vmatprep.subr.bf16.mxu0 %v1231_v4  ;;  %v1167_v15 = vld [vmem:[%s1553_s27] sm:$0xff]  }
   0xf   :  { %v310_v14 = vld [vmem:[%s1551_s20 + $0x10] sm:$0xff] }
  0x11   :  { %316 = vperm.xlu1 %1163, %v309_v6   ;;  %1068 = vmatpush3.bf16.msra.mxu0 %v1166_v11 }
  0x12   :  { %286 = vperm.xlu0 %1162, %v279_v7   ;;  %1089 = vmatprep.subr.bf16.mxu0 %v1168_v12 }
  0x14   :  { %1070 = vmatmul.mubr.msk.bf16.vlgmr.msra.gmra.mxu0 %vm98_vm2, %v1167_v15 }
  0x15   :  { %292 = vperm.xlu1 %1163, %v281_v9   ;;  %1090 = vmatpush3.bf16.msra.mxu0 %v1168_v12 }
  0x16   :  { %289 = vperm.xlu0 %1162, %v280_v10   ;;  %1091 = vmatprep.subr.bf16.mxu0 %v1169_v16 }
  0x19   :  { %322 = vperm.xlu1 %1163, %v311_v13  }
  0x1a   :  { %319 = vperm.xlu0 %1162, %v310_v14  }
  0x1b   :  { %24 = vsyncpa [#allocation3], 0  ;;  %1092 = vmatpush3.bf16.msra.mxu0 %v1169_v16  ;;  %v1170_v17 = vld [vmem:[%s1532_s8 + $0x8] sm:$0xff]   ;;  %v1171_v18 = vld [vmem:[%s1532_s8] sm:$0xff]   ;;  %v276_v19 = vlaneseq  ;;  %vm172_vm7 = vcmask 261120   ;;  %vm418_vm12 = vcmask 64512  }
  0x1c   :  { %1074 = vmatpush3.bf16.msra.mxu1 %v1170_v17  ;;  %v972_v43 = vld [vmem:[%s1531_s7] ss:$0 sm:$0xff]  ;;  %v1172_v58 = vld [vmem:[%s1533_s9 + $0x8] sm:$0xff]   ;;  %s1554_s20 = sld [smem:[#allocation9_spill]]  ;;  %s1233_s24 = smov 32   ;;  %vm832_vm15 = vcmask 523264  }
  0x1d   :  { %1075 = vmatprep.subr.bf16.mxu1 %v1231_v4  ;;  %v277_v20 = vand.u32 127, %v276_v19  ;;  %v1173_v60 = vld [vmem:[%s1533_s9] sm:$0xff]   ;;  %v1175_v2 = vld [vmem:[%s1529_s5 + $0x8] sm:$0xff]   ;;  %s1555_s30 = sld [smem:[#allocation7_spill]] }
  0x1e   :  { %v417_v61 = vld [vmem:[%s1534_s10] sm:$0xf] }
  0x1f   :  { %v426_v62 = vsel %vm102_vm0, %v417_v61, 0  ;;  %v481_v63 = vld [vmem:[%s1535_s11] sm:$0xf] }
  0x20   :  { %1076 = vmatpush3.bf16.msra.mxu1 %v1171_v18  ;;  %1154 = vmatprep.subr.msk.bf16.mxu0 %vm102_vm0, %v481_v63  ;;  %v499_v0 = vsel %vm102_vm0, %v481_v63, 0  ;;  %v1174_v1 = vld [vmem:[%s1529_s5] sm:$0xff]   ;;  %s1234_s5 = smov [#allocation2]  }
  0x21   :  { %1081 = vmatprep.subr.bf16.mxu1 %v1231_v4  ;;  %s961_s11 = sshll.u32 %s1234_s5, 4  ;;  %s962_s11 = int_to_ptr.vmem [resolvable:$true] %s961_s11 }
  0x22   :  { %s1208_s26 = scalar_lea.vmem %s962_s11, 256  ;;  %p1213_p1 = scmp.lt.s32.totalorder %s962_s11, %s962_s11 }
  0x23   :  { %p1209_p0 = scmp.ne.s32.totalorder %s962_s11, %s1208_s26  ;;  %p1214_p2 = scmp.lt.s32.totalorder %s1208_s26, %s1208_s26 }
  0x25   :  { %p1215_p3 = por %p1214_p2, %p1213_p1 }
  0x27   :  { %p1216_p4 = pnand %p1215_p3, %p1209_p0 }
  0x88   :  { %v314_v21 = vpop.permute.xlu1 %313 }
  0x89   :  { %v284_v22 = vpop.permute.xlu0 %283  ;;  %vm324_vm3 = vcmp.eq.s32.totalorder %v277_v20, %v314_v21 }
  0x8a   :  { %vm294_vm4 = vcmp.eq.s32.totalorder %v277_v20, %v284_v22  ;;  %v988_v23 = vsel %vm324_vm3, 1.0, %v1231_v4 }
  0x8b   :  { %v984_v24 = vsel %vm294_vm4, 1.0, %v1231_v4 }
  0x8c   :  { %v317_v25 = vpop.permute.xlu1 %316 }
  0x8d   :  { %v287_v26 = vpop.permute.xlu0 %286  ;;  %vm325_vm5 = vcmp.eq.s32.totalorder %v277_v20, %v317_v25  ;;  %v1176_v25 = vld [vmem:[%s1537_s13 + $0x8] sm:$0xff]  }
  0x8e   :  { %vm295_vm6 = vcmp.eq.s32.totalorder %v277_v20, %v287_v26  ;;  %v989_v27 = vsel %vm325_vm5, 1.0, %v1231_v4  ;;  %v1177_v26 = vld [vmem:[%s1537_s13] sm:$0xff]  }
  0x8f   :  { %v985_v28 = vsel %vm295_vm6, 1.0, %v1231_v4  ;;  %v336_v29 = vpack.c.bf16 %v989_v27, %v988_v23 }
  0x90   :  { %v306_v30 = vpack.c.bf16 %v985_v28, %v984_v24  ;;  %v293_v31 = vpop.permute.xlu1 %292 }
  0x91   :  { %v290_v32 = vpop.permute.xlu0 %289  ;;  %vm297_vm8 = vcmp.eq.s32.totalorder %v277_v20, %v293_v31 }
  0x92   :  { %v1401_v33 = vadd.bf16 %v336_v29, %v306_v30  ;;  %vm296_vm9 = vcmp.eq.s32.totalorder %v277_v20, %v290_v32  ;;  %v987_v34 = vsel %vm297_vm8, 1.0, %v1231_v4 }
  0x93   :  { %v986_v35 = vsel %vm296_vm9, 1.0, %v1231_v4 }
  0x94   :  { %1093 = vmatprep.mubr.msk.bf16.mxu0 %vm172_vm7, %v1401_v33  ;;  %v323_v36 = vpop.permute.xlu1 %322  ;;  %v307_v38 = vpack.c.bf16 %v987_v34, %v986_v35  ;;  %v1004_v35 = vld [vmem:[%s1536_s12] ss:$0 sm:$0xff] }
  0x95   :  { %v320_v37 = vpop.permute.xlu0 %319  ;;  %vm327_vm10 = vcmp.eq.s32.totalorder %v277_v20, %v323_v36 }
  0x96   :  { %vm326_vm11 = vcmp.eq.s32.totalorder %v277_v20, %v320_v37  ;;  %v991_v39 = vsel %vm327_vm10, 1.0, %v1231_v4 }
  0x97   :  { %v990_v40 = vsel %vm326_vm11, 1.0, %v1231_v4 }
  0x98   :  { %v337_v41 = vpack.c.bf16 %v991_v39, %v990_v40 }
  0x9a   :  { %v1409_v42 = vadd.bf16 %v337_v41, %v307_v38 }
  0x9c   :  { %1094 = vmatmul.mubr.msk.bf16.vlgmr.msra.gmra.mxu0 %vm172_vm7, %v1409_v42 }
  0x9d   :  { %1104 = vmatpush3.bf16.msra.mxu0 %v499_v0  ;;  %1105 = vmatprep.mubr.msk.bf16.mxu0 %vm418_vm12, %v1174_v1 }
  0x9e   :  { %1117 = vmatprep.subr.bf16.mxu0 %v1176_v25 }
  0xa4   :  { %1106 = vmatmul.mubr.msk.bf16.vlgmr.msra.gmra.mxu0 %vm418_vm12, %v1175_v2 }
  0xa5   :  { %1118 = vmatpush3.bf16.msra.mxu0 %v1176_v25  ;;  %v727_v25 = vshrl.u32 %v276_v19, 7 }
  0xa6   :  { %1119 = vmatprep.subr.bf16.mxu0 %v1177_v26 }
  0xa9   :  { %1120 = vmatpush3.bf16.msra.mxu0 %v1177_v26 }
  0xaa   :  { %1133 = vmatprep.subr.bf16.mxu0 %v1231_v4 }
  0xd4   :  { %v140_v44 = vpop.f32.mrf.mxu0 }
  0xd5   :  { %v141_v45 = vadd.f32 %v972_v43, %v140_v44 }
  0xd6   :  { %v1071_v46 = vpop.f32.mrf.mxu0 }
  0xd7   :  { %v147_v47 = vmul.f32 0.5, %v141_v45 }
  0xd8   :  { %v143_v48 = vpop.f32.mrf.mxu0 }
  0xd9   :  { %1184 = vtanh.f32 %v147_v47  ;;  %v144_v49 = vadd.f32 %v972_v43, %v143_v48 }
  0xda   :  { %v1072_v50 = vpop.f32.mrf.mxu0 }
  0xdb   :  { %v148_v51 = vmul.f32 0.5, %v144_v49 }
  0xdd   :  { %1186 = vtanh.f32 %v148_v51 }
  0xe6   :  { %v1185_v52 = vpop.eup %1184 }
  0xe7   :  { %v151_v53 = vadd.f32 1.0, %v1185_v52 }
  0xe9   :  { %v1416_v56 = vmul.f32 %v151_v53, %v147_v47 }
  0xea   :  { %v1187_v54 = vpop.eup %1186 }
  0xeb   :  { %v152_v55 = vadd.f32 1.0, %v1187_v54 }
  0xed   :  { %v1418_v57 = vmul.f32 %v152_v55, %v148_v51 }
  0xef   :  { %v1425_v59 = vpack.c.bf16 %v1418_v57, %v1416_v56 }
  0xf1   :  { %1078 = vmatmul.mubr.msk.bf16.vlgmr.msra.gmra.mxu1 %vm172_vm7, %v1425_v59 }
  0xf2   :  { %1082 = vmatpush3.bf16.msra.mxu1 %v1172_v58  ;;  %1085 = vmatprep.mubr.msk.bf16.mxu1 %vm1232_vm1, %v1231_v4 }
  0xf3   :  { %1083 = vmatprep.subr.bf16.mxu1 %v1231_v4 }
  0xf6   :  { %1084 = vmatpush3.bf16.msra.mxu1 %v1173_v60 }
  0xf7   :  { %1153 = vmatprep.subr.msk.bf16.mxu1 %vm102_vm0, %v417_v61 }
  0xf9   :  { %1086 = vmatmul.mubr.msk.bf16.vlgmr.msra.gmra.mxu1 %vm172_vm7, %v1425_v59 }
  0xfa   :  { %1098 = vmatpush3.bf16.msra.mxu1 %v426_v62 }
 0x15c   :  { %v1095_v3 = vpop.f32.mrf.mxu0 }
 0x15d   :  { %v413_v6 = vmul.f32 %v1095_v3, %v1095_v3 }
 0x15e   :  { %v396_v5 = vpop.f32.mrf.mxu0 }
 0x15f   :  { %v411_v8 = vmul.f32 %v396_v5, %v396_v5 }
 0x160   :  { %v1096_v7 = vpop.f32.mrf.mxu0 }
 0x161   :  { %v414_v9 = vmul.f32 %v1096_v7, %v1096_v7 }
 0x162   :  { %v399_v10 = vpop.f32.mrf.mxu0 }
 0x163   :  { %v412_v11 = vmul.f32 %v399_v10, %v399_v10  ;;  %v416_v12 = vpack.c.bf16 %v414_v9, %v413_v6  ;;  %v1005_v10 = vld [vmem:[%s1554_s20] ss:$0 sm:$0xff] }
 0x164   :  { %v1107_v30 = vpop.f32.mrf.mxu0 }
 0x165   :  { %v415_v13 = vpack.c.bf16 %v412_v11, %v411_v8 }
 0x166   :  { %v535_v32 = vpop.f32.mrf.mxu0 }
 0x167   :  { %1099 = vmatprep.mubr.msk.bf16.mxu1 %vm418_vm12, %v415_v13 }
 0x168   :  { %1100 = vmatmul.mubr.msk.bf16.vlgmr.msra.gmra.mxu1 %vm418_vm12, %v416_v12  ;;  %v1108_v39 = vpop.f32.mrf.mxu0 }
 0x169   :  { %1113 = vmatprep.mubr.msk.bf16.mxu1 %vm172_vm7, %v1401_v33 }
 0x16a   :  { %v538_v49 = vpop.f32.mrf.mxu0 }
 0x1b1   :  { %v210_v14 = vpop.f32.mrf.mxu1 }
 0x1b3   :  { %v1079_v15 = vpop.f32.mrf.mxu1 }
 0x1b5   :  { %v213_v16 = vpop.f32.mrf.mxu1 }
 0x1b6   :  { %v274_v24 = vpack.c.bf16 %v213_v16, %v210_v14 }
 0x1b7   :  { %v1080_v17 = vpop.f32.mrf.mxu1 }
 0x1b9   :  { %v267_v18 = vpop.f32.mrf.mxu1 }
 0x1bb   :  { %v1087_v20 = vpop.f32.mrf.mxu1 }
 0x1bd   :  { %v270_v21 = vpop.f32.mrf.mxu1 }
 0x1be   :  { %v275_v22 = vpack.c.bf16 %v270_v21, %v267_v18 }
 0x1bf   :  { %v1088_v23 = vpop.f32.mrf.mxu1 }
 0x1c0   :  { %1109 = vmatprep.subr.bf16.mxu1 %v275_v22 }
 0x1c1   :  { %1110 = vmatpush3.bf16.msra.mxu1 %v275_v22 }
 0x1c2   :  { %1111 = vmatprep.subr.bf16.mxu1 %v274_v24 }
 0x1c5   :  { %1112 = vmatpush3.bf16.msra.mxu1 %v274_v24 }
 0x1c6   :  { %1125 = vmatprep.subr.bf16.mxu1 %v1231_v4 }
 0x1c8   :  { %1114 = vmatmul.mubr.msk.bf16.vlgmr.msra.gmra.mxu1 %vm172_vm7, %v1409_v42 }
 0x1c9   :  { %1129 = vmatprep.mubr.msk.bf16.mxu1 %vm1232_vm1, %v1231_v4 }
 0x228   :  { %v1101_v27 = vpop.f32.mrf.mxu1 }
 0x22a   :  { %v462_v28 = vpop.f32.mrf.mxu1 }
 0x22c   :  { %v1102_v29 = vpop.f32.mrf.mxu1 }
 0x22e   :  { %v465_v31 = vpop.f32.mrf.mxu1 }
 0x288   :  { %v1115_v33 = vpop.f32.mrf.mxu1 }
 0x289   :  { %v593_v34 = vadd.f32 %v1115_v33, %v1101_v27 }
 0x28a   :  { %v584_v36 = vpop.f32.mrf.mxu1 }
 0x28b   :  { %v601_v37 = vadd.f32 %v1107_v30, %v593_v34  ;;  %v585_v38 = vadd.f32 %v584_v36, %v462_v28 }
 0x28c   :  { %v1116_v40 = vpop.f32.mrf.mxu1 }
 0x28d   :  { %v612_v41 = vadd.f32 %v1004_v35, %v601_v37  ;;  %v599_v42 = vadd.f32 %v585_v38, %v535_v32  ;;  %v596_v43 = vadd.f32 %v1116_v40, %v1102_v29  ;;  %v728_v29 = vadd.s32 8, %v727_v25 }
 0x28e   :  { %v587_v44 = vpop.f32.mrf.mxu1 }
 0x28f   :  { %v610_v45 = vadd.f32 %v1004_v35, %v599_v42  ;;  %v602_v46 = vadd.f32 %v1108_v39, %v596_v43  ;;  %v588_v47 = vadd.f32 %v587_v44, %v465_v31  ;;  %v616_v48 = vmul.f32 0.5, %v612_v41  ;;  %v1010_v31 = vld [vmem:[%s1555_s30] ss:$0 sm:$0xff]  ;;  %v1178_v43 = vld [vmem:[%s1539_s15 + $0x18] sm:$0xff]   ;;  %v1179_v44 = vld [vmem:[%s1539_s15 + $0x10] sm:$0xff]  }
 0x290   :  { %vm734_vm13 = vcmp.eq.s32.totalorder %v727_v25, %v1010_v31  ;;  %vm735_vm14 = vcmp.eq.s32.totalorder %v728_v29, %v1010_v31 }
 0x291   :  { %v614_v50 = vmul.f32 0.5, %v610_v45  ;;  %v613_v51 = vadd.f32 %v1004_v35, %v602_v46  ;;  %v600_v52 = vadd.f32 %v588_v47, %v538_v49  ;;  %v1011_v19 = vsel %vm734_vm13, 1.0, %v1231_v4  ;;  %v1180_v45 = vld [vmem:[%s1539_s15 + $0x8] sm:$0xff]   ;;  %v1181_v46 = vld [vmem:[%s1539_s15] sm:$0xff]  }
 0x292   :  { %v1012_v40 = vsel %vm735_vm14, 1.0, %v1231_v4 }
 0x293   :  { %1188 = vtanh.f32 %v614_v50  ;;  %v617_v53 = vmul.f32 0.5, %v613_v51  ;;  %v611_v54 = vadd.f32 %v1004_v35, %v600_v52  ;;  %v740_v42 = vpack.c.bf16 %v1012_v40, %v1011_v19 }
 0x294   :  { %1190 = vtanh.f32 %v616_v48 }
 0x295   :  { %1192 = vtanh.f32 %v617_v53  ;;  %v615_v55 = vmul.f32 0.5, %v611_v54  ;;  %v1182_v54 = vld [vmem:[%s1541_s17 + $0x8] sm:$0xff]  }
 0x297   :  { %1194 = vtanh.f32 %v615_v55 }
 0x2a0   :  { %v1189_v58 = vpop.eup %1188 }
 0x2a1   :  { %v1191_v60 = vpop.eup %1190  ;;  %v622_v62 = vadd.f32 1.0, %v1189_v58  ;;  %v1014_v58 = vld [vmem:[%s1540_s16] ss:$0 sm:$0xff] }
 0x2a2   :  { %v1193_v61 = vpop.eup %1192  ;;  %v624_v1 = vadd.f32 1.0, %v1191_v60 }
 0x2a3   :  { %v625_v63 = vadd.f32 1.0, %v1193_v61  ;;  %v626_v5 = vmul.f32 %v622_v62, %v614_v50 }
 0x2a4   :  { %v1195_v0 = vpop.eup %1194  ;;  %v628_v7 = vmul.f32 %v624_v1, %v616_v48 }
 0x2a5   :  { %v623_v2 = vadd.f32 1.0, %v1195_v0  ;;  %v629_v3 = vmul.f32 %v625_v63, %v617_v53 }
 0x2a7   :  { %v627_v6 = vmul.f32 %v623_v2, %v615_v55  ;;  %v631_v9 = vpack.c.bf16 %v629_v3, %v628_v7  ;;  %v1183_v55 = vld [vmem:[%s1541_s17] sm:$0xff]  }
 0x2a9   :  { %v630_v8 = vpack.c.bf16 %v627_v6, %v626_v5 }
 0x2ab   :  { %1121 = vmatprep.mubr.msk.bf16.mxu0 %vm172_vm7, %v630_v8 }
 0x2ac   :  { %1122 = vmatmul.mubr.msk.bf16.vlgmr.msra.gmra.mxu0 %vm172_vm7, %v631_v9 }
 0x2ad   :  { %1141 = vmatprep.mubr.msk.bf16.mxu0 %vm1232_vm1, %v1231_v4  ;;  %1134 = vmatpush3.bf16.msra.mxu0 %v1178_v43 }
 0x2ae   :  { %1135 = vmatprep.subr.bf16.mxu0 %v1231_v4 }
 0x2b1   :  { %1136 = vmatpush3.bf16.msra.mxu0 %v1179_v44 }
 0x2b2   :  { %1137 = vmatprep.subr.bf16.mxu0 %v1231_v4 }
 0x2b5   :  { %1138 = vmatpush3.bf16.msra.mxu0 %v1180_v45 }
 0x2b6   :  { %1139 = vmatprep.subr.bf16.mxu0 %v1231_v4 }
 0x2b9   :  { %1140 = vmatpush3.bf16.msra.mxu0 %v1181_v46 }
 0x36c   :  { %v1123_v11 = vpop.f32.mrf.mxu0 }
 0x36d   :  { %v704_v12 = vadd.f32 %v1123_v11, %v1005_v10 }
 0x36e   :  { %v695_v13 = vpop.f32.mrf.mxu0 }
 0x36f   :  { %v712_v14 = vmul.f32 0.5, %v704_v12  ;;  %v696_v15 = vadd.f32 %v1005_v10, %v695_v13 }
 0x370   :  { %v1124_v16 = vpop.f32.mrf.mxu0 }
 0x371   :  { %1196 = vtanh.f32 %v712_v14  ;;  %v710_v17 = vmul.f32 0.5, %v696_v15  ;;  %v707_v18 = vadd.f32 %v1124_v16, %v1005_v10 }
 0x372   :  { %v698_v20 = vpop.f32.mrf.mxu0 }
 0x373   :  { %v713_v21 = vmul.f32 0.5, %v707_v18  ;;  %v699_v22 = vadd.f32 %v1005_v10, %v698_v20  ;;  %1198 = vtanh.f32 %v710_v17  ;;  %v1020_v10 = vld [vmem:[%s1542_s18] ss:$0 sm:$0xff] }
 0x375   :  { %1200 = vtanh.f32 %v713_v21  ;;  %v711_v23 = vmul.f32 0.5, %v699_v22 }
 0x377   :  { %1202 = vtanh.f32 %v711_v23 }
 0x37e   :  { %v1197_v24 = vpop.eup %1196 }
 0x37f   :  { %v720_v27 = vadd.f32 1.0, %v1197_v24 }
 0x380   :  { %v1199_v26 = vpop.eup %1198 }
 0x381   :  { %v724_v33 = vmul.f32 %v720_v27, %v712_v14  ;;  %v718_v34 = vadd.f32 1.0, %v1199_v26 }
 0x382   :  { %v1201_v28 = vpop.eup %1200 }
 0x383   :  { %v721_v30 = vadd.f32 1.0, %v1201_v28  ;;  %v722_v39 = vmul.f32 %v718_v34, %v710_v17 }
 0x384   :  { %v1203_v32 = vpop.eup %1202 }
 0x385   :  { %v725_v35 = vmul.f32 %v721_v30, %v713_v21  ;;  %v719_v36 = vadd.f32 1.0, %v1203_v32 }
 0x387   :  { %v742_v37 = vpack.c.bf16 %v725_v35, %v724_v33  ;;  %v723_v38 = vmul.f32 %v719_v36, %v711_v23 }
 0x389   :  { %1126 = vmatpush3.bf16.msra.mxu1 %v742_v37  ;;  %v741_v41 = vpack.c.bf16 %v723_v38, %v722_v39 }
 0x38a   :  { %1127 = vmatprep.subr.bf16.mxu1 %v1231_v4 }
 0x38d   :  { %1128 = vmatpush3.bf16.msra.mxu1 %v741_v41 }
 0x38e   :  { %1145 = vmatprep.subr.bf16.mxu1 %v1231_v4 }
 0x390   :  { %1130 = vmatmul.mubr.msk.bf16.vlgmr.msra.gmra.mxu1 %vm172_vm7, %v740_v42 }
 0x391   :  { %1149 = vmatprep.mubr.msk.bf16.mxu1 %vm1232_vm1, %v1231_v4  ;;  %1146 = vmatpush3.bf16.msra.mxu1 %v1182_v54 }
 0x392   :  { %1147 = vmatprep.subr.bf16.mxu1 %v1231_v4 }
 0x395   :  { %1148 = vmatpush3.bf16.msra.mxu1 %v1183_v55 }
 0x450   :  { %v780_v47 = vpop.f32.mrf.mxu1 }
 0x452   :  { %v1131_v48 = vpop.f32.mrf.mxu1 }
 0x454   :  { %v783_v49 = vpop.f32.mrf.mxu1 }
 0x455   :  { %v787_v50 = vpack.c.bf16 %v783_v49, %v780_v47 }
 0x456   :  { %v1132_v51 = vpop.f32.mrf.mxu1 }
 0x457   :  { %789 = vrot.lane.b32.xlu0 %v787_v50, %s1233_s24 }
 0x4c9   :  { %v790_v52 = vpop.permute.xlu0 %789 }
 0x4ca   :  { %v792_v53 = vsel %vm172_vm7, %v1425_v59, %v790_v52 }
 0x4cb   :  { %1142 = vmatmul.mubr.msk.bf16.vlgmr.msra.gmra.mxu0 %vm832_vm15, %v792_v53 }
 0x58b   :  { %v869_v60 = vpop.f32.mrf.mxu0 }
 0x58c   :  { %v870_v61 = vadd.f32 %v1014_v58, %v869_v60 }
 0x58d   :  { %v1143_v59 = vpop.f32.mrf.mxu0 }
 0x58e   :  { %v876_v62 = vmul.f32 0.5, %v870_v61 }
 0x58f   :  { %v872_v63 = vpop.f32.mrf.mxu0 }
 0x590   :  { %1204 = vtanh.f32 %v876_v62  ;;  %v873_v0 = vadd.f32 %v1014_v58, %v872_v63 }
 0x591   :  { %v1144_v1 = vpop.f32.mrf.mxu0 }
 0x592   :  { %v877_v2 = vmul.f32 0.5, %v873_v0 }
 0x594   :  { %1206 = vtanh.f32 %v877_v2 }
 0x59d   :  { %v1205_v4 = vpop.eup %1204 }
 0x59e   :  { %v880_v3 = vadd.f32 1.0, %v1205_v4 }
 0x5a0   :  { %v882_v7 = vmul.f32 %v880_v3, %v876_v62 }
 0x5a1   :  { %v1207_v5 = vpop.eup %1206 }
 0x5a2   :  { %v881_v6 = vadd.f32 1.0, %v1207_v5 }
 0x5a4   :  { %v883_v8 = vmul.f32 %v881_v6, %v877_v2 }
 0x5a6   :  { %v884_v9 = vpack.c.bf16 %v883_v8, %v882_v7 }
 0x5a8   :  { %1150 = vmatmul.mubr.msk.bf16.vlgmr.msra.gmra.mxu1 %vm172_vm7, %v884_v9 }
 0x668   :  { %v945_v11 = vpop.f32.mrf.mxu1 }
 0x669   :  { %v946_v12 = vadd.f32 %v1020_v10, %v945_v11 }
 0x66a   :  { %v1151_v13 = vpop.f32.mrf.mxu1 }
 0x66b   :  { %v952_v14 = vadd.f32 %v946_v12, %v1416_v56 }
 0x66c   :  { %v948_v15 = vpop.f32.mrf.mxu1 }
 0x66d   :  { %954 = vst [vmem:[#allocation2] sm:$0xff] %v952_v14  ;;  %v949_v16 = vadd.f32 %v1020_v10, %v948_v15 }
 0x66e   :  { %v1152_v17 = vpop.f32.mrf.mxu1 }
 0x66f   :  { %v953_v18 = vadd.f32 %v949_v16, %v1418_v57 }
 0x671   :  { %955 = vst [vmem:[#allocation2 + $0x8] sm:$0xff] %v953_v18 }
 0x672   :  { %1219 = shalt.err (!%p1216_p4)
}
 0x673   :  { %s1235_s18 = smov 128   ;;  %s1236_s27 = smov 8  }
 0x674   :  { %967 = dma.vmem_to_hbm [thread:$0]  %s962_s11, 256, %s1543_s19, [#allocation3], %s1235_s18, %s1235_s18, %s1236_s27  }
 0x675   :  { %1228 = dma.done.wait [#allocation3], 256  }
 0x676   :  { %1229 = vsyncadd [#allocation3], 4294967040 }
 0x677   :  { %971 = vsyncpa [#allocation3], 1 }

</bundles_post_ra>
